<compile_context>
chip_gen: v7x
topology: tpu7x:2x2x1
jax: 0.10.0
libtpu: 0.0.40
codegen_flags: <defaults>
</compile_context>

<pallas_src>
import functools
import math

import jax
import jax.numpy as jnp
from jax import lax
from jax.experimental import pallas as pl
from jax.experimental.pallas import tpu as pltpu


def _lcm(a, b):
    return a * b // math.gcd(a, b)


def _make_kernel(shifts, rc, nchunk):
    """Depthwise conv on row-flattened (rows, H*W) layout.

    refs: (x, w, b, out)
      x   : (br, HW)        input rows (each row = one image-channel plane)
      w   : (kk, rc, HW)    per-tap, per-row masked weights (BN folded, merged)
      b   : (rc, HW)        merged bias, broadcast over H*W
      out : (br, HW)
    Rows cycle channels with period C; rc % C == 0 so every rc-row chunk sees
    the same channel pattern and the same (kk, rc, HW) weight slab applies.
    """
    kk = len(shifts)

    def kernel(x_ref, w_ref, b_ref, o_ref):
        def chunk(r0):
            x = x_ref[pl.ds(r0, rc), :].astype(jnp.float32)       # (rc, HW)
            acc = b_ref[...]                                       # f32 (rc, HW)
            for t in range(kk):
                s = shifts[t]
                # Static lane rotation (XLU); wrap-around positions carry a
                # zero weight in w_ref, which realizes the conv zero-padding.
                xs = pltpu.roll(x, s, axis=1) if s else x
                acc = acc + xs * w_ref[t]
            o_ref[pl.ds(r0, rc), :] = acc.astype(o_ref.dtype)

        if nchunk == 1:
            chunk(0)
        else:
            def body(j, carry):
                chunk(pl.multiple_of(j * rc, rc))
                return carry
            lax.fori_loop(0, nchunk, body, 0,
                          unroll=True if nchunk <= 8 else 8)

    return kernel


def local_perceptron_forward(x_nchw, ks, conv_weights, bn_params, eps=1e-5):
    """x_nchw: (N, C, H, W); conv_weights[i]: (C, 1, k, k); bn_params[i]: (gamma, beta, mean, var)."""
    N, C, H, W = x_nchw.shape
    ks = tuple(int(k) for k in ks)
    kmax = max(ks)
    P = kmax // 2
    kk = kmax * kmax
    HW = H * W

    # --- fold BN into each branch and merge all branches into a single
    #     kmax x kmax depthwise kernel + per-channel bias (exact in eval mode).
    w_merged = jnp.zeros((C, kmax, kmax), jnp.float32)
    b_merged = jnp.zeros((C,), jnp.float32)
    for i, k in enumerate(ks):
        gamma, beta, mean, var = bn_params[i]
        scale = gamma / jnp.sqrt(var + eps)                          # (C,)
        wf = conv_weights[i][:, 0].astype(jnp.float32) * scale[:, None, None]
        pad = (kmax - k) // 2
        w_merged = w_merged + jnp.pad(wf, ((0, 0), (pad, pad), (pad, pad)))
        b_merged = b_merged + (beta - mean * scale)

    # --- per-tap flattened-lane shifts + boundary-validity masks (zero pad).
    hh = jnp.arange(H)[:, None]
    ww = jnp.arange(W)[None, :]
    shifts, valid_rows = [], []
    for dy in range(kmax):
        for dx in range(kmax):
            oy, ox = dy - P, dx - P
            v = ((hh + oy >= 0) & (hh + oy < H) &
                 (ww + ox >= 0) & (ww + ox < W))
            valid_rows.append(v.reshape(HW))
            shifts.append((-(oy * W + ox)) % HW)                     # static ints
    valid = jnp.stack(valid_rows).astype(jnp.float32)                # (kk, HW)
    w_taps = jnp.transpose(w_merged.reshape(C, kk), (1, 0))          # (kk, C)
    wmask = w_taps[:, :, None] * valid[:, None, :]                   # (kk, C, HW)

    # --- row layout: (N, C, H, W) -> (N*C, H*W); free (contiguous) reshape.
    R = N * C
    X = x_nchw.reshape(R, HW)
    itemsize = X.dtype.itemsize

    # Row-chunk size keeps sublanes full and the channel pattern periodic.
    rc = _lcm(8, C)
    Rp = ((R + rc - 1) // rc) * rc
    if Rp != R:
        X = jnp.pad(X, ((0, Rp - R), (0, 0)))    # rare: N*C not multiple of lcm(8,C)

    wm = jnp.tile(wmask, (1, rc // C, 1)).astype(jnp.float32)        # (kk, rc, HW)
    bm = jnp.tile(jnp.broadcast_to(b_merged[:, None], (C, HW)),
                  (rc // C, 1)).astype(jnp.float32)                  # (rc, HW)

    # --- generation-aware block sizing.
    try:
        vmem_cap = int(pltpu.get_tpu_info().vmem_capacity_bytes)
    except Exception:                                                # pragma: no cover
        vmem_cap = 64 * 2**20          # conservative default (v7x per-TC VMEM)
    two_core_hint = vmem_cap <= 96 * 2**20      # v7x-like parts have 2 TCs/chip
    budget = min(vmem_cap // 3, 40 * 2**20)

    resident = (wm.size + bm.size) * 4
    row_bytes = HW * itemsize
    nrcs = Rp // rc
    divs = [d for d in range(1, nrcs + 1) if nrcs % d == 0]

    def _fits(d):               # double-buffered in + out blocks + resident weights
        return 2 * 2 * d * rc * row_bytes + resident <= budget

    fit = [d for d in divs if _fits(d)]
    if fit:
        d = max(fit)
        if two_core_hint:
            multi = [e for e in fit if nrcs // e >= 2]   # keep both TCs busy
            if multi:
                d = max(multi)
    else:
        d = 1
        # TODO(synk): if even one lcm(8,C) x H*W chunk overflows VMEM, tile H*W
        # with a halo; not needed for RepMLPNet-sized feature maps.
    br = d * rc
    nchunk = br // rc
    grid = (Rp // br,)

    kernel = _make_kernel(tuple(shifts), rc, nchunk)

    blk_bytes = br * row_bytes
    vmem_limit = int(min(40 * 2**20,
                         max(8 * 2**20, 1.2 * (2 * 2 * blk_bytes + resident) + (2 << 20))))
    flops = 2 * Rp * HW * kk
    bytes_accessed = int(2 * Rp * HW * itemsize + resident)

    out_rows = pl.pallas_call(
        kernel,
        out_shape=jax.ShapeDtypeStruct((Rp, HW), X.dtype),
        grid_spec=pltpu.PrefetchScalarGridSpec(
            num_scalar_prefetch=0,
            grid=grid,
            in_specs=[
                pl.BlockSpec((br, HW), lambda r: (r, 0)),
                pl.BlockSpec((kk, rc, HW), lambda r: (0, 0, 0)),
                pl.BlockSpec((rc, HW), lambda r: (0, 0)),
            ],
            out_specs=pl.BlockSpec((br, HW), lambda r: (r, 0)),
        ),
        compiler_params=pltpu.CompilerParams(
            dimension_semantics=("parallel",),
            vmem_limit_bytes=vmem_limit,
        ),
        cost_estimate=pl.CostEstimate(
            flops=flops, transcendentals=0, bytes_accessed=bytes_accessed),
    )(X, wm, bm)

    out = out_rows[:R] if Rp != R else out_rows
    return out.reshape(N, C, H, W)


def _reference_forward(x_nchw, ks, conv_weights, bn_params, eps=1e-5):
    """Plain-JAX reference mirroring the PyTorch module (eval-mode BN)."""
    out = 0
    C = x_nchw.shape[1]
    for i, k in enumerate(ks):
        conv = jax.lax.conv_general_dilated(
            x_nchw, conv_weights[i], window_strides=(1, 1),
            padding=[(k // 2, k // 2), (k // 2, k // 2)],
            dimension_numbers=("NCHW", "OIHW", "NCHW"),
            feature_group_count=C)
        gamma, beta, mean, var = bn_params[i]
        scale = gamma / jnp.sqrt(var + eps)
        shift = beta - mean * scale
        out = out + conv * scale[None, :, None, None] + shift[None, :, None, None]
    return out


if __name__ == "__main__":
    # Module config: num_sharesets=4, reparam_conv_k=(1, 3), deploy=False
    N, C, H, W = 2, 4, 16, 16
    ks = (1, 3)

    key = jax.random.PRNGKey(0)
    k_x, *k_params = jax.random.split(key, 1 + 5 * len(ks))

    x = jax.random.normal(k_x, (N, C, H, W), dtype=jnp.float32)

    conv_weights, bn_params = [], []
    for i, k in enumerate(ks):
        kw, kg, kb, km, kv = k_params[5 * i: 5 * i + 5]
        conv_weights.append(
            0.1 * jax.random.normal(kw, (C, 1, k, k), dtype=jnp.float32))
        gamma = 1.0 + 0.1 * jax.random.normal(kg, (C,), dtype=jnp.float32)
        beta = 0.1 * jax.random.normal(kb, (C,), dtype=jnp.float32)
        mean = 0.1 * jax.random.normal(km, (C,), dtype=jnp.float32)
        var = jnp.abs(0.5 + 0.1 * jax.random.normal(kv, (C,), dtype=jnp.float32))
        bn_params.append((gamma, beta, mean, var))

    fwd = jax.jit(functools.partial(local_perceptron_forward, ks=ks,
                                    conv_weights=conv_weights,
                                    bn_params=bn_params))
    out = jax.block_until_ready(fwd(x))

    ref = _reference_forward(x, ks, conv_weights, bn_params)
    assert out.shape == (N, C, H, W)
    assert jnp.allclose(out, ref, atol=1e-5, rtol=1e-5), "mismatch vs reference"

    print("KERNEL_OK")
</pallas_src>

<mosaic_0001>
module attributes {stable_mosaic.version = 11 : i64} {
  func.func @kernel(%arg0: i32, %arg1: memref<8x256xf32, #tpu.memory_space<vmem>>, %arg2: memref<9x8x256xf32, #tpu.memory_space<vmem>>, %arg3: memref<8x256xf32, #tpu.memory_space<vmem>>, %arg4: memref<8x256xf32, #tpu.memory_space<vmem>>) attributes {dimension_semantics = [#tpu.dimension_semantics<parallel>], iteration_bounds = array<i64: 1>, scalar_prefetch = 0 : i64, scratch_operands = 0 : i64, tpu.core_type = #tpu.core_type<tc>, window_params = [{transform_indices = @transform_0, window_bounds = array<i64: 8, 256>}, {pipeline_mode = #tpu.pipeline_mode<synchronous>, transform_indices = @transform_1, window_bounds = array<i64: 9, 8, 256>}, {pipeline_mode = #tpu.pipeline_mode<synchronous>, transform_indices = @transform_2, window_bounds = array<i64: 8, 256>}, {transform_indices = @transform_3, window_bounds = array<i64: 8, 256>}]} {
    %c0 = arith.constant 0 : index
    %c0_0 = arith.constant 0 : index
    %0 = vector.load %arg1[%c0, %c0_0] : memref<8x256xf32, #tpu.memory_space<vmem>>, vector<8x256xf32>
    %c0_1 = arith.constant 0 : index
    %c0_2 = arith.constant 0 : index
    %1 = vector.load %arg3[%c0_1, %c0_2] : memref<8x256xf32, #tpu.memory_space<vmem>>, vector<8x256xf32>
    %c17_i32 = arith.constant 17 : i32
    %2 = tpu.dynamic_rotate %0 by %c17_i32 dim 1 : vector<8x256xf32>, i32 -> vector<8x256xf32>
    %c0_3 = arith.constant 0 : index
    %c0_4 = arith.constant 0 : index
    %c0_5 = arith.constant 0 : index
    %3 = vector.load %arg2[%c0_3, %c0_4, %c0_5] : memref<9x8x256xf32, #tpu.memory_space<vmem>>, vector<1x8x256xf32>
    %4 = vector.shape_cast %3 : vector<1x8x256xf32> to vector<8x256xf32>
    %5 = arith.mulf %2, %4 : vector<8x256xf32>
    %6 = arith.addf %1, %5 : vector<8x256xf32>
    %c16_i32 = arith.constant 16 : i32
    %7 = tpu.dynamic_rotate %0 by %c16_i32 dim 1 : vector<8x256xf32>, i32 -> vector<8x256xf32>
    %c1 = arith.constant 1 : index
    %c0_6 = arith.constant 0 : index
    %c0_7 = arith.constant 0 : index
    %8 = vector.load %arg2[%c1, %c0_6, %c0_7] : memref<9x8x256xf32, #tpu.memory_space<vmem>>, vector<1x8x256xf32>
    %9 = vector.shape_cast %8 : vector<1x8x256xf32> to vector<8x256xf32>
    %10 = arith.mulf %7, %9 : vector<8x256xf32>
    %11 = arith.addf %6, %10 : vector<8x256xf32>
    %c15_i32 = arith.constant 15 : i32
    %12 = tpu.dynamic_rotate %0 by %c15_i32 dim 1 : vector<8x256xf32>, i32 -> vector<8x256xf32>
    %c2 = arith.constant 2 : index
    %c0_8 = arith.constant 0 : index
    %c0_9 = arith.constant 0 : index
    %13 = vector.load %arg2[%c2, %c0_8, %c0_9] : memref<9x8x256xf32, #tpu.memory_space<vmem>>, vector<1x8x256xf32>
    %14 = vector.shape_cast %13 : vector<1x8x256xf32> to vector<8x256xf32>
    %15 = arith.mulf %12, %14 : vector<8x256xf32>
    %16 = arith.addf %11, %15 : vector<8x256xf32>
    %c1_i32 = arith.constant 1 : i32
    %17 = tpu.dynamic_rotate %0 by %c1_i32 dim 1 : vector<8x256xf32>, i32 -> vector<8x256xf32>
    %c3 = arith.constant 3 : index
    %c0_10 = arith.constant 0 : index
    %c0_11 = arith.constant 0 : index
    %18 = vector.load %arg2[%c3, %c0_10, %c0_11] : memref<9x8x256xf32, #tpu.memory_space<vmem>>, vector<1x8x256xf32>
    %19 = vector.shape_cast %18 : vector<1x8x256xf32> to vector<8x256xf32>
    %20 = arith.mulf %17, %19 : vector<8x256xf32>
    %21 = arith.addf %16, %20 : vector<8x256xf32>
    %c4 = arith.constant 4 : index
    %c0_12 = arith.constant 0 : index
    %c0_13 = arith.constant 0 : index
    %22 = vector.load %arg2[%c4, %c0_12, %c0_13] : memref<9x8x256xf32, #tpu.memory_space<vmem>>, vector<1x8x256xf32>
    %23 = vector.shape_cast %22 : vector<1x8x256xf32> to vector<8x256xf32>
    %24 = arith.mulf %0, %23 : vector<8x256xf32>
    %25 = arith.addf %21, %24 : vector<8x256xf32>
    %c255_i32 = arith.constant 255 : i32
    %26 = tpu.dynamic_rotate %0 by %c255_i32 dim 1 : vector<8x256xf32>, i32 -> vector<8x256xf32>
    %c5 = arith.constant 5 : index
    %c0_14 = arith.constant 0 : index
    %c0_15 = arith.constant 0 : index
    %27 = vector.load %arg2[%c5, %c0_14, %c0_15] : memref<9x8x256xf32, #tpu.memory_space<vmem>>, vector<1x8x256xf32>
    %28 = vector.shape_cast %27 : vector<1x8x256xf32> to vector<8x256xf32>
    %29 = arith.mulf %26, %28 : vector<8x256xf32>
    %30 = arith.addf %25, %29 : vector<8x256xf32>
    %c241_i32 = arith.constant 241 : i32
    %31 = tpu.dynamic_rotate %0 by %c241_i32 dim 1 : vector<8x256xf32>, i32 -> vector<8x256xf32>
    %c6 = arith.constant 6 : index
    %c0_16 = arith.constant 0 : index
    %c0_17 = arith.constant 0 : index
    %32 = vector.load %arg2[%c6, %c0_16, %c0_17] : memref<9x8x256xf32, #tpu.memory_space<vmem>>, vector<1x8x256xf32>
    %33 = vector.shape_cast %32 : vector<1x8x256xf32> to vector<8x256xf32>
    %34 = arith.mulf %31, %33 : vector<8x256xf32>
    %35 = arith.addf %30, %34 : vector<8x256xf32>
    %c240_i32 = arith.constant 240 : i32
    %36 = tpu.dynamic_rotate %0 by %c240_i32 dim 1 : vector<8x256xf32>, i32 -> vector<8x256xf32>
    %c7 = arith.constant 7 : index
    %c0_18 = arith.constant 0 : index
    %c0_19 = arith.constant 0 : index
    %37 = vector.load %arg2[%c7, %c0_18, %c0_19] : memref<9x8x256xf32, #tpu.memory_space<vmem>>, vector<1x8x256xf32>
    %38 = vector.shape_cast %37 : vector<1x8x256xf32> to vector<8x256xf32>
    %39 = arith.mulf %36, %38 : vector<8x256xf32>
    %40 = arith.addf %35, %39 : vector<8x256xf32>
    %c239_i32 = arith.constant 239 : i32
    %41 = tpu.dynamic_rotate %0 by %c239_i32 dim 1 : vector<8x256xf32>, i32 -> vector<8x256xf32>
    %c8 = arith.constant 8 : index
    %c0_20 = arith.constant 0 : index
    %c0_21 = arith.constant 0 : index
    %42 = vector.load %arg2[%c8, %c0_20, %c0_21] : memref<9x8x256xf32, #tpu.memory_space<vmem>>, vector<1x8x256xf32>
    %43 = vector.shape_cast %42 : vector<1x8x256xf32> to vector<8x256xf32>
    %44 = arith.mulf %41, %43 : vector<8x256xf32>
    %45 = arith.addf %40, %44 : vector<8x256xf32>
    %c0_22 = arith.constant 0 : index
    %c0_23 = arith.constant 0 : index
    %46 = vector.load %arg4[%c0_22, %c0_23] : memref<8x256xf32, #tpu.memory_space<vmem>>, vector<8x256xf32>
    tpu.vector_store %arg4[%c0_22, %c0_23], %45 {strides = array<i32>} : memref<8x256xf32, #tpu.memory_space<vmem>>, vector<8x256xf32>,
    return
  }
  func.func @transform_0(%arg0: i32) -> (i32, i32) {
    %c0_i32 = arith.constant 0 : i32
    %c0_i32_0 = arith.constant 0 : i32
    return %arg0, %c0_i32 : i32, i32
  }
  func.func @transform_1(%arg0: i32) -> (i32, i32, i32) {
    %c0_i32 = arith.constant 0 : i32
    %c0_i32_0 = arith.constant 0 : i32
    %c0_i32_1 = arith.constant 0 : i32
    %c0_i32_2 = arith.constant 0 : i32
    return %c0_i32, %c0_i32_0, %c0_i32_1 : i32, i32, i32
  }
  func.func @transform_2(%arg0: i32) -> (i32, i32) {
    %c0_i32 = arith.constant 0 : i32
    %c0_i32_0 = arith.constant 0 : i32
    %c0_i32_1 = arith.constant 0 : i32
    return %c0_i32, %c0_i32_0 : i32, i32
  }
  func.func @transform_3(%arg0: i32) -> (i32, i32) {
    %c0_i32 = arith.constant 0 : i32
    %c0_i32_0 = arith.constant 0 : i32
    return %arg0, %c0_i32 : i32, i32
  }
}

</mosaic_0001>

<bundles_post_ra>
// kernel: tile.14
= control target key start
LH: loop header
LB: loop body
LE: loop exit
PB: predicated region body
PF: predicated region fallthrough
CT: control target
= control target key end

     0   :  { %s652_s0 = inlined_call_operand.vmem [shape: f32[9,2,4,256], index: 0, kind: input, shape index: {}]   ;;  %s653_s1 = inlined_call_operand.vmem [shape: f32[9,8,256], index: 1, kind: output, shape index: {}]  }
   0x1   :  { %v356_v0 = vld [vmem:[%s652_s0 + $0x8c] sm:$0xf]  ;;  %v357_v1 = vld [vmem:[%s652_s0 + $0x88] sm:$0xf]  ;;  %v358_v2 = vld [vmem:[%s652_s0 + $0x84] sm:$0xf] }
   0x2   :  { %8 = vst [vmem:[#allocation0 + $0x118] sm:$0xf] %v356_v0  ;;  %13 = vst [vmem:[#allocation0 + $0x110] sm:$0xf] %v357_v1  ;;  %v359_v3 = vld [vmem:[%s652_s0 + $0x80] sm:$0xf] }
   0x3   :  { %18 = vst [vmem:[#allocation0 + $0x108] sm:$0xf] %v358_v2  ;;  %v360_v4 = vld [vmem:[%s652_s0 + $0x7c] sm:$0xf]  ;;  %v361_v5 = vld [vmem:[%s652_s0 + $0x78] sm:$0xf] }
   0x4   :  { %23 = vst [vmem:[#allocation0 + $0x100] sm:$0xf] %v359_v3  ;;  %28 = vst [vmem:[#allocation0 + $0xf8] sm:$0xf] %v360_v4  ;;  %v362_v6 = vld [vmem:[%s652_s0 + $0x74] sm:$0xf] }
   0x5   :  { %33 = vst [vmem:[#allocation0 + $0xf0] sm:$0xf] %v361_v5  ;;  %v363_v7 = vld [vmem:[%s652_s0 + $0x70] sm:$0xf]  ;;  %v364_v8 = vld [vmem:[%s652_s0 + $0x6c] sm:$0xf] }
   0x6   :  { %38 = vst [vmem:[#allocation0 + $0xe8] sm:$0xf] %v362_v6  ;;  %43 = vst [vmem:[#allocation0 + $0xe0] sm:$0xf] %v363_v7  ;;  %v365_v9 = vld [vmem:[%s652_s0 + $0x68] sm:$0xf] }
   0x7   :  { %48 = vst [vmem:[#allocation0 + $0xd8] sm:$0xf] %v364_v8  ;;  %v366_v10 = vld [vmem:[%s652_s0 + $0x64] sm:$0xf]  ;;  %v367_v11 = vld [vmem:[%s652_s0 + $0x60] sm:$0xf] }
   0x8   :  { %53 = vst [vmem:[#allocation0 + $0xd0] sm:$0xf] %v365_v9  ;;  %58 = vst [vmem:[#allocation0 + $0xc8] sm:$0xf] %v366_v10  ;;  %v368_v12 = vld [vmem:[%s652_s0 + $0x5c] sm:$0xf] }
   0x9   :  { %63 = vst [vmem:[#allocation0 + $0xc0] sm:$0xf] %v367_v11  ;;  %v369_v13 = vld [vmem:[%s652_s0 + $0x58] sm:$0xf]  ;;  %v370_v14 = vld [vmem:[%s652_s0 + $0x54] sm:$0xf] }
   0xa   :  { %68 = vst [vmem:[#allocation0 + $0xb8] sm:$0xf] %v368_v12  ;;  %73 = vst [vmem:[#allocation0 + $0xb0] sm:$0xf] %v369_v13  ;;  %v371_v15 = vld [vmem:[%s652_s0 + $0x50] sm:$0xf] }
   0xb   :  { %78 = vst [vmem:[#allocation0 + $0xa8] sm:$0xf] %v370_v14  ;;  %v372_v16 = vld [vmem:[%s652_s0 + $0x4c] sm:$0xf]  ;;  %v373_v17 = vld [vmem:[%s652_s0 + $0x48] sm:$0xf] }
   0xc   :  { %83 = vst [vmem:[#allocation0 + $0xa0] sm:$0xf] %v371_v15  ;;  %88 = vst [vmem:[#allocation0 + $0x98] sm:$0xf] %v372_v16  ;;  %v374_v18 = vld [vmem:[%s652_s0 + $0x44] sm:$0xf] }
   0xd   :  { %93 = vst [vmem:[#allocation0 + $0x90] sm:$0xf] %v373_v17  ;;  %v375_v19 = vld [vmem:[%s652_s0 + $0x40] sm:$0xf]  ;;  %v376_v20 = vld [vmem:[%s652_s0 + $0x3c] sm:$0xf] }
   0xe   :  { %98 = vst [vmem:[#allocation0 + $0x88] sm:$0xf] %v374_v18  ;;  %103 = vst [vmem:[#allocation0 + $0x80] sm:$0xf] %v375_v19  ;;  %v377_v21 = vld [vmem:[%s652_s0 + $0x38] sm:$0xf] }
   0xf   :  { %108 = vst [vmem:[#allocation0 + $0x78] sm:$0xf] %v376_v20  ;;  %v378_v22 = vld [vmem:[%s652_s0 + $0x34] sm:$0xf]  ;;  %v379_v23 = vld [vmem:[%s652_s0 + $0x30] sm:$0xf] }
  0x10   :  { %113 = vst [vmem:[#allocation0 + $0x70] sm:$0xf] %v377_v21  ;;  %118 = vst [vmem:[#allocation0 + $0x68] sm:$0xf] %v378_v22  ;;  %v380_v24 = vld [vmem:[%s652_s0 + $0x2c] sm:$0xf] }
  0x11   :  { %123 = vst [vmem:[#allocation0 + $0x60] sm:$0xf] %v379_v23  ;;  %v381_v25 = vld [vmem:[%s652_s0 + $0x28] sm:$0xf]  ;;  %v382_v26 = vld [vmem:[%s652_s0 + $0x24] sm:$0xf] }
  0x12   :  { %128 = vst [vmem:[#allocation0 + $0x58] sm:$0xf] %v380_v24  ;;  %133 = vst [vmem:[#allocation0 + $0x50] sm:$0xf] %v381_v25  ;;  %v383_v27 = vld [vmem:[%s652_s0 + $0x20] sm:$0xf] }
  0x13   :  { %138 = vst [vmem:[#allocation0 + $0x48] sm:$0xf] %v382_v26  ;;  %v384_v28 = vld [vmem:[%s652_s0 + $0x1c] sm:$0xf]  ;;  %v385_v29 = vld [vmem:[%s652_s0 + $0x18] sm:$0xf] }
  0x14   :  { %143 = vst [vmem:[#allocation0 + $0x40] sm:$0xf] %v383_v27  ;;  %148 = vst [vmem:[#allocation0 + $0x38] sm:$0xf] %v384_v28  ;;  %v386_v30 = vld [vmem:[%s652_s0 + $0x14] sm:$0xf] }
  0x15   :  { %153 = vst [vmem:[#allocation0 + $0x30] sm:$0xf] %v385_v29  ;;  %v387_v31 = vld [vmem:[%s652_s0 + $0x10] sm:$0xf]  ;;  %v388_v32 = vld [vmem:[%s652_s0 + $0xc] sm:$0xf] }
  0x16   :  { %158 = vst [vmem:[#allocation0 + $0x28] sm:$0xf] %v386_v30  ;;  %163 = vst [vmem:[#allocation0 + $0x20] sm:$0xf] %v387_v31  ;;  %v389_v33 = vld [vmem:[%s652_s0 + $0x8] sm:$0xf] }
  0x17   :  { %168 = vst [vmem:[#allocation0 + $0x18] sm:$0xf] %v388_v32  ;;  %v390_v34 = vld [vmem:[%s652_s0 + $0x4] sm:$0xf]  ;;  %v178_v35 = vld [vmem:[%s652_s0] sm:$0xf] }
  0x18   :  { %173 = vst [vmem:[#allocation0 + $0x10] sm:$0xf] %v389_v33  ;;  %177 = vst [vmem:[#allocation0 + $0x8] sm:$0xf] %v390_v34  ;;  %v263_v36 = vld [vmem:[#allocation0 + $0xa8] sm:$0xf]  }
  0x19   :  { %179 = vst [vmem:[#allocation0] sm:$0xf] %v178_v35  ;;  %v267_v37 = vld [vmem:[#allocation0 + $0xb0] sm:$0xf]   ;;  %v271_v38 = vld [vmem:[#allocation0 + $0xb8] sm:$0xf]  }
  0x1a   :  { %v251_v39 = vld [vmem:[#allocation0 + $0x90] sm:$0xf]   ;;  %v255_v40 = vld [vmem:[#allocation0 + $0x98] sm:$0xf]   ;;  %v259_v41 = vld [vmem:[#allocation0 + $0xa0] sm:$0xf]  }
  0x1b   :  { %411 = vst [vmem:[%s653_s1 + $0x58] sm:$0xf] %v263_v36   ;;  %412 = vst [vmem:[%s653_s1 + $0x54] sm:$0xf] %v267_v37   ;;  %v239_v42 = vld [vmem:[#allocation0 + $0x78] sm:$0xf]  }
  0x1c   :  { %413 = vst [vmem:[%s653_s1 + $0x5c] sm:$0xf] %v271_v38   ;;  %v243_v43 = vld [vmem:[#allocation0 + $0x80] sm:$0xf]   ;;  %v247_v44 = vld [vmem:[#allocation0 + $0x88] sm:$0xf]  }
  0x1d   :  { %408 = vst [vmem:[%s653_s1 + $0x44] sm:$0xf] %v251_v39   ;;  %409 = vst [vmem:[%s653_s1 + $0x4c] sm:$0xf] %v255_v40   ;;  %v227_v45 = vld [vmem:[#allocation0 + $0x60] sm:$0xf]  }
  0x1e   :  { %410 = vst [vmem:[%s653_s1 + $0x50] sm:$0xf] %v259_v41   ;;  %v231_v46 = vld [vmem:[#allocation0 + $0x68] sm:$0xf]   ;;  %v235_v47 = vld [vmem:[#allocation0 + $0x70] sm:$0xf]  }
  0x1f   :  { %405 = vst [vmem:[%s653_s1 + $0x3c] sm:$0xf] %v239_v42   ;;  %406 = vst [vmem:[%s653_s1 + $0x40] sm:$0xf] %v243_v43   ;;  %v215_v48 = vld [vmem:[#allocation0 + $0x48] sm:$0xf]  }
  0x20   :  { %407 = vst [vmem:[%s653_s1 + $0x48] sm:$0xf] %v247_v44   ;;  %v219_v49 = vld [vmem:[#allocation0 + $0x50] sm:$0xf]   ;;  %v223_v50 = vld [vmem:[#allocation0 + $0x58] sm:$0xf]  }
  0x21   :  { %402 = vst [vmem:[%s653_s1 + $0x30] sm:$0xf] %v227_v45   ;;  %403 = vst [vmem:[%s653_s1 + $0x38] sm:$0xf] %v231_v46   ;;  %v203_v51 = vld [vmem:[#allocation0 + $0x30] sm:$0xf]  }
  0x22   :  { %404 = vst [vmem:[%s653_s1 + $0x34] sm:$0xf] %v235_v47   ;;  %v207_v52 = vld [vmem:[#allocation0 + $0x38] sm:$0xf]   ;;  %v211_v53 = vld [vmem:[#allocation0 + $0x40] sm:$0xf]  }
  0x23   :  { %399 = vst [vmem:[%s653_s1 + $0x28] sm:$0xf] %v215_v48   ;;  %400 = vst [vmem:[%s653_s1 + $0x24] sm:$0xf] %v219_v49   ;;  %v191_v54 = vld [vmem:[#allocation0 + $0x18] sm:$0xf]  }
  0x24   :  { %401 = vst [vmem:[%s653_s1 + $0x2c] sm:$0xf] %v223_v50   ;;  %v195_v55 = vld [vmem:[#allocation0 + $0x20] sm:$0xf]   ;;  %v199_v56 = vld [vmem:[#allocation0 + $0x28] sm:$0xf]  }
  0x25   :  { %396 = vst [vmem:[%s653_s1 + $0x14] sm:$0xf] %v203_v51   ;;  %397 = vst [vmem:[%s653_s1 + $0x1c] sm:$0xf] %v207_v52   ;;  %v180_v57 = vld [vmem:[#allocation0] sm:$0xf]  }
  0x26   :  { %398 = vst [vmem:[%s653_s1 + $0x20] sm:$0xf] %v211_v53   ;;  %v183_v58 = vld [vmem:[#allocation0 + $0x8] sm:$0xf]   ;;  %v187_v59 = vld [vmem:[#allocation0 + $0x10] sm:$0xf]  }
  0x27   :  { %393 = vst [vmem:[%s653_s1 + $0xc] sm:$0xf] %v191_v54   ;;  %394 = vst [vmem:[%s653_s1 + $0x10] sm:$0xf] %v195_v55   ;;  %v275_v60 = vld [vmem:[#allocation0 + $0xc0] sm:$0xf]  }
  0x28   :  { %395 = vst [vmem:[%s653_s1 + $0x18] sm:$0xf] %v199_v56   ;;  %181 = vst [vmem:[%s653_s1] sm:$0xf] %v180_v57   ;;  %v279_v61 = vld [vmem:[#allocation0 + $0xc8] sm:$0xf]  }
  0x29   :  { %391 = vst [vmem:[%s653_s1 + $0x8] sm:$0xf] %v183_v58   ;;  %392 = vst [vmem:[%s653_s1 + $0x4] sm:$0xf] %v187_v59   ;;  %v283_v62 = vld [vmem:[#allocation0 + $0xd0] sm:$0xf]  }
  0x2a   :  { %414 = vst [vmem:[%s653_s1 + $0x60] sm:$0xf] %v275_v60   ;;  %415 = vst [vmem:[%s653_s1 + $0x68] sm:$0xf] %v279_v61   ;;  %v287_v63 = vld [vmem:[#allocation0 + $0xd8] sm:$0xf]  }
  0x2b   :  { %416 = vst [vmem:[%s653_s1 + $0x64] sm:$0xf] %v283_v62   ;;  %v291_v0 = vld [vmem:[#allocation0 + $0xe0] sm:$0xf]   ;;  %v295_v1 = vld [vmem:[#allocation0 + $0xe8] sm:$0xf]  }
  0x2c   :  { %417 = vst [vmem:[%s653_s1 + $0x6c] sm:$0xf] %v287_v63   ;;  %418 = vst [vmem:[%s653_s1 + $0x70] sm:$0xf] %v291_v0   ;;  %v299_v2 = vld [vmem:[#allocation0 + $0xf0] sm:$0xf]  }
  0x2d   :  { %419 = vst [vmem:[%s653_s1 + $0x78] sm:$0xf] %v295_v1   ;;  %v303_v3 = vld [vmem:[#allocation0 + $0xf8] sm:$0xf]   ;;  %v307_v4 = vld [vmem:[#allocation0 + $0x100] sm:$0xf]  }
  0x2e   :  { %420 = vst [vmem:[%s653_s1 + $0x74] sm:$0xf] %v299_v2   ;;  %421 = vst [vmem:[%s653_s1 + $0x7c] sm:$0xf] %v303_v3   ;;  %v311_v5 = vld [vmem:[#allocation0 + $0x108] sm:$0xf]  }
  0x2f   :  { %422 = vst [vmem:[%s653_s1 + $0x80] sm:$0xf] %v307_v4   ;;  %v315_v6 = vld [vmem:[#allocation0 + $0x110] sm:$0xf]   ;;  %v319_v7 = vld [vmem:[#allocation0 + $0x118] sm:$0xf]  }
  0x30   :  { %423 = vst [vmem:[%s653_s1 + $0x88] sm:$0xf] %v311_v5   ;;  %424 = vst [vmem:[%s653_s1 + $0x84] sm:$0xf] %v315_v6  }
  0x31   :  { %425 = vst [vmem:[%s653_s1 + $0x8c] sm:$0xf] %v319_v7  }

// kernel: local_perceptron_forward.1
= control target key start
LH: loop header
LB: loop body
LE: loop exit
PB: predicated region body
PF: predicated region fallthrough
CT: control target
= control target key end

     0   :  { %s168_s14 = smov 16   ;;  %s169_s15 = smov 17   ;;  %v22_v2 = vlaneseq  ;;  %s300_s0 = inlined_call_operand.vmem [shape: f32[8,256], index: 0, kind: input, shape index: {}]   ;;  %s301_s1 = inlined_call_operand.vmem [shape: f32[9,8,256], index: 1, kind: input, shape index: {}]   ;;  %s302_s2 = inlined_call_operand.vmem [shape: f32[8,256], index: 2, kind: input, shape index: {}]   ;;  %s303_s3 = inlined_call_operand.vmem [shape: f32[8,256], index: 3, kind: output, shape index: {}]  }
   0x1   :  { %v199_v0 = vld [vmem:[%s300_s0] sm:$0xff]  ;;  %v206_v1 = vld [vmem:[%s300_s0 + $0x8] sm:$0xff]  ;;  %s170_s18 = smov 15   ;;  %s171_s19 = smov 1   ;;  %v144_v16 = vld [vmem:[%s301_s1 + $0x10] sm:$0xff] }
   0x2   :  { %33 = vrot.lane.b32.xlu1 %v199_v0, %s168_s14  ;;  %18 = vrot.lane.b32.xlu0 %v199_v0, %s169_s15  ;;  %s172_s20 = smov 127   ;;  %s173_s0 = smov 113   ;;  %v222_v3 = vand.u32 127, %v22_v2  ;;  %v27_v6 = vld [vmem:[%s301_s1] sm:$0xff]  ;;  %v28_v7 = vld [vmem:[%s301_s1 + $0x8] sm:$0xff] }
   0x3   :  { %s174_s21 = smov 112   ;;  %s175_s22 = smov 111   ;;  %v16_v10 = vld [vmem:[%s302_s2] sm:$0xff]  ;;  %v17_v11 = vld [vmem:[%s302_s2 + $0x8] sm:$0xff]  ;;  %v145_v17 = vld [vmem:[%s301_s1 + $0x18] sm:$0xff] }
   0x4   :  { %vm24_vm0 = vcmp.lt.s32.totalorder %v222_v3, 17  ;;  %vm37_vm1 = vcmp.lt.s32.totalorder %v222_v3, 16  ;;  %vm51_vm2 = vcmp.lt.s32.totalorder %v222_v3, 15  ;;  %v146_v24 = vld [vmem:[%s301_s1 + $0x20] sm:$0xff]  ;;  %v147_v25 = vld [vmem:[%s301_s1 + $0x28] sm:$0xff]  ;;  %vm65_vm3 = vcmp.lt.s32.totalorder %v222_v3, 1 }
   0x5   :  { %v148_v30 = vld [vmem:[%s301_s1 + $0x30] sm:$0xff]  ;;  %v149_v31 = vld [vmem:[%s301_s1 + $0x38] sm:$0xff]  ;;  %v150_v42 = vld [vmem:[%s301_s1 + $0x40] sm:$0xff]  ;;  %vm86_vm4 = vcmp.lt.s32.totalorder %v222_v3, 127  ;;  %vm100_vm5 = vcmp.lt.s32.totalorder %v222_v3, 113  ;;  %vm114_vm6 = vcmp.lt.s32.totalorder %v222_v3, 112 }
   0x6   :  { %35 = vrot.lane.b32.xlu1 %v206_v1, %s168_s14  ;;  %20 = vrot.lane.b32.xlu0 %v206_v1, %s169_s15  ;;  %v151_v43 = vld [vmem:[%s301_s1 + $0x48] sm:$0xff]  ;;  %v78_v48 = vmul.f32 %v150_v42, %v199_v0  ;;  %v152_v52 = vld [vmem:[%s301_s1 + $0x50] sm:$0xff]  ;;  %vm128_vm7 = vcmp.lt.s32.totalorder %v222_v3, 111 }
   0x7   :  { %v79_v51 = vmul.f32 %v151_v43, %v206_v1  ;;  %v153_v53 = vld [vmem:[%s301_s1 + $0x58] sm:$0xff]  ;;  %v154_v58 = vld [vmem:[%s301_s1 + $0x60] sm:$0xff]  ;;  %v155_v59 = vld [vmem:[%s301_s1 + $0x68] sm:$0xff] }
   0x8   :  { %v156_v2 = vld [vmem:[%s301_s1 + $0x70] sm:$0xff] }
   0xa   :  { %49 = vrot.lane.b32.xlu1 %v206_v1, %s170_s18  ;;  %47 = vrot.lane.b32.xlu0 %v199_v0, %s170_s18 }
   0xe   :  { %63 = vrot.lane.b32.xlu1 %v206_v1, %s171_s19  ;;  %61 = vrot.lane.b32.xlu0 %v199_v0, %s171_s19 }
  0x12   :  { %84 = vrot.lane.b32.xlu1 %v206_v1, %s172_s20  ;;  %82 = vrot.lane.b32.xlu0 %v199_v0, %s172_s20 }
  0x16   :  { %98 = vrot.lane.b32.xlu1 %v206_v1, %s173_s0  ;;  %96 = vrot.lane.b32.xlu0 %v199_v0, %s173_s0 }
  0x1a   :  { %112 = vrot.lane.b32.xlu1 %v206_v1, %s174_s21  ;;  %110 = vrot.lane.b32.xlu0 %v199_v0, %s174_s21 }
  0x1e   :  { %126 = vrot.lane.b32.xlu1 %v206_v1, %s175_s22  ;;  %124 = vrot.lane.b32.xlu0 %v199_v0, %s175_s22 }
  0x74   :  { %v34_v4 = vpop.permute.xlu1 %33  ;;  %v19_v5 = vpop.permute.xlu0 %18 }
  0x78   :  { %v36_v8 = vpop.permute.xlu1 %35  ;;  %v21_v9 = vpop.permute.xlu0 %20 }
  0x79   :  { %v25_v12 = vsel %vm24_vm0, %v19_v5, %v21_v9  ;;  %v26_v13 = vsel %vm24_vm0, %v21_v9, %v19_v5  ;;  %v38_v18 = vsel %vm37_vm1, %v34_v4, %v36_v8  ;;  %v39_v19 = vsel %vm37_vm1, %v36_v8, %v34_v4  ;;  %v157_v4 = vld [vmem:[%s301_s1 + $0x78] sm:$0xff] }
  0x7a   :  { %v29_v14 = vmul.f32 %v27_v6, %v26_v13  ;;  %v30_v15 = vmul.f32 %v28_v7, %v25_v12  ;;  %v43_v28 = vmul.f32 %v144_v16, %v39_v19  ;;  %v44_v29 = vmul.f32 %v145_v17, %v38_v18  ;;  %v159_v16 = vld [vmem:[%s301_s1 + $0x88] sm:$0xff] }
  0x7c   :  { %v31_v20 = vadd.f32 %v29_v14, %v16_v10  ;;  %v32_v21 = vadd.f32 %v30_v15, %v17_v11  ;;  %v50_v22 = vpop.permute.xlu1 %49  ;;  %v48_v23 = vpop.permute.xlu0 %47  ;;  %v158_v15 = vld [vmem:[%s301_s1 + $0x80] sm:$0xff] }
  0x7d   :  { %v52_v26 = vsel %vm51_vm2, %v48_v23, %v50_v22  ;;  %v53_v27 = vsel %vm51_vm2, %v50_v22, %v48_v23 }
  0x7e   :  { %v45_v32 = vadd.f32 %v43_v28, %v31_v20  ;;  %v46_v33 = vadd.f32 %v44_v29, %v32_v21  ;;  %v57_v34 = vmul.f32 %v146_v24, %v53_v27  ;;  %v58_v35 = vmul.f32 %v147_v25, %v52_v26 }
  0x80   :  { %v64_v36 = vpop.permute.xlu1 %63  ;;  %v62_v37 = vpop.permute.xlu0 %61  ;;  %v59_v44 = vadd.f32 %v57_v34, %v45_v32  ;;  %v60_v45 = vadd.f32 %v58_v35, %v46_v33 }
  0x81   :  { %v66_v38 = vsel %vm65_vm3, %v62_v37, %v64_v36  ;;  %v67_v39 = vsel %vm65_vm3, %v64_v36, %v62_v37 }
  0x82   :  { %v71_v40 = vmul.f32 %v148_v30, %v67_v39  ;;  %v72_v41 = vmul.f32 %v149_v31, %v66_v38 }
  0x84   :  { %v85_v46 = vpop.permute.xlu1 %84  ;;  %v83_v47 = vpop.permute.xlu0 %82  ;;  %v73_v49 = vadd.f32 %v71_v40, %v59_v44  ;;  %v74_v50 = vadd.f32 %v72_v41, %v60_v45 }
  0x85   :  { %v87_v54 = vsel %vm86_vm4, %v83_v47, %v85_v46  ;;  %v88_v55 = vsel %vm86_vm4, %v85_v46, %v83_v47 }
  0x86   :  { %v81_v62 = vadd.f32 %v79_v51, %v74_v50  ;;  %v80_v63 = vadd.f32 %v78_v48, %v73_v49  ;;  %v92_v0 = vmul.f32 %v152_v52, %v87_v54  ;;  %v93_v1 = vmul.f32 %v153_v53, %v88_v55 }
  0x88   :  { %v99_v56 = vpop.permute.xlu1 %98  ;;  %v97_v57 = vpop.permute.xlu0 %96  ;;  %v94_v11 = vadd.f32 %v92_v0, %v80_v63  ;;  %v95_v12 = vadd.f32 %v93_v1, %v81_v62 }
  0x89   :  { %v101_v60 = vsel %vm100_vm5, %v97_v57, %v99_v56  ;;  %v102_v61 = vsel %vm100_vm5, %v99_v56, %v97_v57 }
  0x8a   :  { %v106_v5 = vmul.f32 %v154_v58, %v101_v60  ;;  %v107_v6 = vmul.f32 %v155_v59, %v102_v61 }
  0x8c   :  { %v113_v7 = vpop.permute.xlu1 %112  ;;  %v111_v8 = vpop.permute.xlu0 %110  ;;  %v108_v17 = vadd.f32 %v106_v5, %v94_v11  ;;  %v109_v18 = vadd.f32 %v107_v6, %v95_v12 }
  0x8d   :  { %v115_v9 = vsel %vm114_vm6, %v111_v8, %v113_v7  ;;  %v116_v10 = vsel %vm114_vm6, %v113_v7, %v111_v8 }
  0x8e   :  { %v120_v13 = vmul.f32 %v156_v2, %v115_v9  ;;  %v121_v14 = vmul.f32 %v157_v4, %v116_v10 }
  0x90   :  { %v127_v19 = vpop.permute.xlu1 %126  ;;  %v125_v20 = vpop.permute.xlu0 %124  ;;  %v122_v23 = vadd.f32 %v120_v13, %v108_v17  ;;  %v123_v3 = vadd.f32 %v121_v14, %v109_v18 }
  0x91   :  { %v129_v21 = vsel %vm128_vm7, %v125_v20, %v127_v19  ;;  %v130_v22 = vsel %vm128_vm7, %v127_v19, %v125_v20 }
  0x92   :  { %v134_v24 = vmul.f32 %v158_v15, %v129_v21  ;;  %v135_v25 = vmul.f32 %v159_v16, %v130_v22 }
  0x94   :  { %v136_v26 = vadd.f32 %v134_v24, %v122_v23  ;;  %v137_v27 = vadd.f32 %v135_v25, %v123_v3 }
  0x96   :  { %138 = vst [vmem:[%s303_s3] sm:$0xff] %v136_v26  ;;  %139 = vst [vmem:[%s303_s3 + $0x8] sm:$0xff] %v137_v27 }

</bundles_post_ra>
